<compile_context>
chip_gen: v6e
topology: v6e:2x2x1
jax: 0.10.0
libtpu: 0.0.40
codegen_flags: <defaults>
</compile_context>

<pallas_src>
import jax
import jax.numpy as jnp
from jax import lax
from jax.experimental import pallas as pl
from jax.experimental.pallas import tpu as pltpu

LANE = 128


def _round_up(v, m):
    return ((v + m - 1) // m) * m


def _pad2d(a, shape):
    return jnp.pad(a, [(0, t - s) for s, t in zip(a.shape, shape)])


# ----------------------------- Pallas kernel ------------------------------- #
def _gnn_kernel(adj_ref, xw_ref, b1_ref, wa_ref, ba_ref, wo_ref, bo_ref,
                out_ref, m_scr, l_scr, acc_scr):
    i = pl.program_id(0)

    # ---- init online-softmax running state on the first node block ----
    @pl.when(i == 0)
    def _init():
        m_scr[...] = jnp.full(m_scr.shape, -jnp.inf, dtype=m_scr.dtype)
        l_scr[...] = jnp.zeros(l_scr.shape, dtype=l_scr.dtype)
        acc_scr[...] = jnp.zeros(acc_scr.shape, dtype=acc_scr.dtype)

    # ---- GCNConv for this row block: aggregate the precomputed, lane-dense xw ----
    pre = jnp.dot(adj_ref[...], xw_ref[...],
                  preferred_element_type=jnp.float32)                     # [TM, Hp] f32
    h = jnp.maximum(pre + b1_ref[...], 0.0)                               # relu

    # ---- attention logits on the MXU: [TM, Hp] @ [Hp, 1] + SMEM scalar bias ----
    logits = jnp.dot(h, wa_ref[...],
                     preferred_element_type=jnp.float32) + ba_ref[0, 0]   # [TM, 1]

    # ---- online softmax over node blocks (flash-style running state) ----
    m_prev = m_scr[...]                                                   # [1, 1]
    m_new = jnp.maximum(m_prev, jnp.max(logits, axis=0, keepdims=True))   # [1, 1]
    alpha = jnp.exp(m_prev - m_new)                                       # [1, 1]
    p = jnp.exp(logits - m_new)                                           # [TM, 1]
    l_scr[...] = alpha * l_scr[...] + jnp.sum(p, axis=0, keepdims=True)
    # p^T @ h on the MXU (contract over the node axis) -> [1, Hp]
    pth = lax.dot_general(p, h, (((0,), (0,)), ((), ())),
                          preferred_element_type=jnp.float32)
    acc_scr[...] = alpha * acc_scr[...] + pth
    m_scr[...] = m_new

    # ---- finalize on the last block: normalize (exact divide, runs once) + output ----
    @pl.when(i == pl.num_programs(0) - 1)
    def _finalize():
        h_att = acc_scr[...] / l_scr[...]                                 # [1, Hp]
        out = jnp.dot(h_att, wo_ref[...],
                      preferred_element_type=jnp.float32) + bo_ref[...]   # [1, Doutp]
        out_ref[...] = out.astype(out_ref.dtype)                          # lane-dense store


# ------------------------------- wrapper ------------------------------------ #
def _vmem_capacity_bytes():
    try:
        return int(pltpu.get_tpu_info().vmem_capacity_bytes)
    except Exception:
        return 64 << 20   # conservative fallback (v7x per-TensorCore VMEM)


def _auto_block_rows(n, row_bytes, vmem_capacity):
    """Largest TM (multiple of 256, else 128, else 8) dividing n whose double-buffered
    adjacency block fits in ~40% of physical VMEM."""
    budget = int(vmem_capacity * 0.4)
    cap = min(max(8, budget // max(1, 2 * row_bytes)), n, 1024)
    for step in (256, 128, 8):
        best = 0
        t = step
        while t <= cap:
            if n % t == 0:
                best = t
            t += step
        if best:
            return best
    return n   # no aligned divisor: fall back to a single block


def gnn_with_attention(adj, x, w1, b1, wa, ba, wo, bo, *,
                       block_rows=None, matmul_dtype=jnp.bfloat16):
    """adj: [N,N] gcn-normalized adjacency; x: [N,Din]; w1: [Din,H]; b1: [1,H];
    wa: [1,H]; ba: [1,1]; wo: [H,Dout]; bo: [1,Dout].  Returns [1,Dout] float32."""
    n, _din = x.shape
    h_dim = w1.shape[1]
    dout = wo.shape[1]

    hp = _round_up(h_dim, LANE)        # lane-pad hidden axis
    doutp = _round_up(dout, LANE)      # lane-pad output axis

    itemsize = jnp.dtype(matmul_dtype).itemsize
    vmem_cap = _vmem_capacity_bytes()

    tm = _auto_block_rows(n, n * itemsize, vmem_cap) if block_rows is None else block_rows
    if tm != n:
        # TODO(synk): masked tail path (wrapper-side node padding + logit masking) for N % TM != 0.
        assert n % tm == 0 and tm % 8 == 0, (n, tm)
    nblk = n // tm

    # x @ W1 hoisted out of the kernel: computed once, lane-dense [N, Hp].
    # Zero-padding is exact: padded W1 columns / b1 entries are 0 so padded hidden features
    # stay 0 through relu; padded Wa rows / Wo rows+cols / bo cols are 0.
    xw = jnp.dot(x.astype(jnp.float32), w1.astype(jnp.float32),
                 precision=jax.lax.Precision.HIGHEST)
    xw_c = _pad2d(xw, (n, hp)).astype(matmul_dtype)
    adj_c = adj.astype(matmul_dtype)   # TODO(synk): fp8(e4m3) adj on v7x / int8+scale on v6e.

    b1p = _pad2d(b1.astype(jnp.float32), (1, hp))
    wa_col = _pad2d(wa.astype(jnp.float32), (1, hp)).T          # [Hp, 1]
    ba2 = ba.astype(jnp.float32).reshape(1, 1)
    wop = _pad2d(wo.astype(jnp.float32), (hp, doutp))
    bop = _pad2d(bo.astype(jnp.float32), (1, doutp))

    # VMEM budget from the actual buffers (streamed adj block double-buffered; resident
    # operands conservatively assumed double-buffered too); never below the 32 MiB default.
    est = (2 * tm * n * itemsize
           + 2 * (n * hp * itemsize + (hp + hp + hp * doutp + doutp) * 4)
           + 2 * doutp * 4 + (hp + 2) * 4)
    vmem_limit = int(min(int(vmem_cap * 0.9),
                         max(32 << 20, int(est * 1.25) + (4 << 20))))

    flops = 2 * n * n * hp + 4 * n * hp + 2 * hp * doutp
    bytes_accessed = (adj_c.size * adj_c.dtype.itemsize
                      + xw_c.size * xw_c.dtype.itemsize
                      + (b1p.size + wa_col.size + ba2.size + wop.size + bop.size) * 4
                      + doutp * 4)
    cost = pl.CostEstimate(flops=int(flops), transcendentals=int(n + 2 * nblk),
                           bytes_accessed=int(bytes_accessed))

    # TODO(synk): on v7x add a leading "parallel" grid axis of size 2 (per-TensorCore partial
    # online-softmax states emitted as outputs and merged outside) to engage both TCs.
    grid_spec = pltpu.PrefetchScalarGridSpec(
        num_scalar_prefetch=0,
        grid=(nblk,),
        in_specs=[
            pl.BlockSpec((tm, n), lambda i: (i, 0)),               # adj row block (streamed)
            pl.BlockSpec((n, hp), lambda i: (0, 0)),               # xw  (resident)
            pl.BlockSpec((1, hp), lambda i: (0, 0)),               # b1
            pl.BlockSpec((hp, 1), lambda i: (0, 0)),               # Wa column
            pl.BlockSpec(memory_space=pltpu.MemorySpace.SMEM),     # ba scalar in SMEM
            pl.BlockSpec((hp, doutp), lambda i: (0, 0)),           # Wo
            pl.BlockSpec((1, doutp), lambda i: (0, 0)),            # bo
        ],
        out_specs=pl.BlockSpec((1, doutp), lambda i: (0, 0)),
        scratch_shapes=[
            pltpu.VMEM((1, 1), jnp.float32),     # running max
            pltpu.VMEM((1, 1), jnp.float32),     # running softmax denom
            pltpu.VMEM((1, hp), jnp.float32),    # running attention-weighted sum
        ],
    )

    out_padded = pl.pallas_call(
        _gnn_kernel,
        out_shape=jax.ShapeDtypeStruct((1, doutp), jnp.float32),
        grid_spec=grid_spec,
        compiler_params=pltpu.CompilerParams(
            dimension_semantics=("arbitrary",),   # block axis carries online-softmax state
            vmem_limit_bytes=vmem_limit),
        cost_estimate=cost,
    )(adj_c, xw_c, b1p, wa_col, ba2, wop, bop)

    return out_padded[:, :dout]


# ------------------------------ JAX glue ------------------------------------ #
def build_gcn_norm_adj(edge_index, num_nodes):
    """Dense D^-1/2 (A + I) D^-1/2 exactly as PyG gcn_norm with self-loops."""
    # TODO(synk): replace the dense O(N^2) adjacency with CSR/edge offsets fed through
    # PrefetchScalarGridSpec scalar prefetch and a per-block sparse SpMM in-kernel.
    src, dst = edge_index[0], edge_index[1]
    loop = jnp.arange(num_nodes, dtype=edge_index.dtype)
    src = jnp.concatenate([src, loop])   # add_self_loops(edge_index)
    dst = jnp.concatenate([dst, loop])
    a_hat = jnp.zeros((num_nodes, num_nodes), jnp.float32).at[dst, src].add(1.0)
    deg = jnp.sum(a_hat, axis=1)
    dinv = jnp.where(deg > 0, 1.0 / jnp.sqrt(deg), 0.0)
    return dinv[:, None] * a_hat * dinv[None, :]


def reference_forward(adj, x, w1, b1, wa, ba, wo, bo):
    hi = jax.lax.Precision.HIGHEST
    h = jax.nn.relu(jnp.dot(adj, jnp.dot(x, w1, precision=hi), precision=hi) + b1)
    logits = jnp.dot(h, wa.T, precision=hi) + ba
    att = jax.nn.softmax(logits, axis=0)
    h_att = jnp.dot(att.T, h, precision=hi)
    return jnp.dot(h_att, wo, precision=hi) + bo


# ------------------------------- main --------------------------------------- #
if __name__ == "__main__":
    num_nodes, input_dim, hidden_dim, output_dim = 64, 16, 32, 4

    key = jax.random.PRNGKey(0)
    k_x, k_w1, k_b1, k_wa, k_ba, k_wo, k_bo = jax.random.split(key, 7)

    x = jax.random.normal(k_x, (num_nodes, input_dim), jnp.float32)

    # Deterministic ring graph (both directions), no pre-existing self loops.
    src = jnp.arange(num_nodes, dtype=jnp.int32)
    dst = (src + 1) % num_nodes
    edge_index = jnp.stack([jnp.concatenate([src, dst]),
                            jnp.concatenate([dst, src])], axis=0)

    # Parameters (already transposed to [in, out] layout).
    w1 = jax.random.normal(k_w1, (input_dim, hidden_dim), jnp.float32) * 0.1
    b1 = jax.random.normal(k_b1, (1, hidden_dim), jnp.float32) * 0.1
    wa = jax.random.normal(k_wa, (1, hidden_dim), jnp.float32) * 0.1
    ba = jax.random.normal(k_ba, (1, 1), jnp.float32) * 0.1
    wo = jax.random.normal(k_wo, (hidden_dim, output_dim), jnp.float32) * 0.1
    bo = jax.random.normal(k_bo, (1, output_dim), jnp.float32) * 0.1

    adj = build_gcn_norm_adj(edge_index, num_nodes)
    ref = reference_forward(adj, x, w1, b1, wa, ba, wo, bo)

    # Exact path with an explicit multi-block grid (exercises the online-softmax carry).
    out_f32 = gnn_with_attention(adj, x, w1, b1, wa, ba, wo, bo,
                                 block_rows=16, matmul_dtype=jnp.float32)
    out_f32 = jax.block_until_ready(out_f32)
    assert out_f32.shape == (1, output_dim)
    assert jnp.allclose(out_f32, ref, atol=5e-3, rtol=5e-3), (out_f32, ref)

    # Default fast path: auto tile size + bf16 MXU operands with f32 accumulation.
    out_bf16 = gnn_with_attention(adj, x, w1, b1, wa, ba, wo, bo)
    out_bf16 = jax.block_until_ready(out_bf16)
    assert out_bf16.shape == (1, output_dim)
    assert jnp.allclose(out_bf16, ref, atol=2e-2, rtol=2e-2), (out_bf16, ref)

    print("KERNEL_OK")
</pallas_src>

<mosaic_0001>
module attributes {stable_mosaic.version = 11 : i64} {
  func.func @_gnn_kernel(%arg0: i32, %arg1: memref<16x64xf32, #tpu.memory_space<vmem>>, %arg2: memref<64x128xf32, #tpu.memory_space<vmem>>, %arg3: memref<1x128xf32, #tpu.memory_space<vmem>>, %arg4: memref<128x1xf32, #tpu.memory_space<vmem>>, %arg5: memref<1x1xf32, #tpu.memory_space<smem>>, %arg6: memref<128x128xf32, #tpu.memory_space<vmem>>, %arg7: memref<1x128xf32, #tpu.memory_space<vmem>>, %arg8: memref<1x128xf32, #tpu.memory_space<vmem>>, %arg9: memref<1x1xf32, #tpu.memory_space<vmem>>, %arg10: memref<1x1xf32, #tpu.memory_space<vmem>>, %arg11: memref<1x128xf32, #tpu.memory_space<vmem>>) attributes {dimension_semantics = [#tpu.dimension_semantics<arbitrary>], iteration_bounds = array<i64: 4>, scalar_prefetch = 0 : i64, scratch_operands = 3 : i64, tpu.core_type = #tpu.core_type<tc>, window_params = [{transform_indices = @transform_0, window_bounds = array<i64: 16, 64>}, {pipeline_mode = #tpu.pipeline_mode<synchronous>, transform_indices = @transform_1, window_bounds = array<i64: 64, 128>}, {pipeline_mode = #tpu.pipeline_mode<synchronous>, transform_indices = @transform_2, window_bounds = array<i64: 1, 128>}, {pipeline_mode = #tpu.pipeline_mode<synchronous>, transform_indices = @transform_3, window_bounds = array<i64: 128, 1>}, {transform_indices = @transform_4, window_bounds = array<i64: 1, 1>}, {pipeline_mode = #tpu.pipeline_mode<synchronous>, transform_indices = @transform_5, window_bounds = array<i64: 128, 128>}, {pipeline_mode = #tpu.pipeline_mode<synchronous>, transform_indices = @transform_6, window_bounds = array<i64: 1, 128>}, {pipeline_mode = #tpu.pipeline_mode<synchronous>, transform_indices = @transform_7, window_bounds = array<i64: 1, 128>}]} {
    %c0_i32 = arith.constant 0 : i32
    %0 = arith.cmpi eq, %arg0, %c0_i32 : i32
    %1 = arith.extui %0 : i1 to i32
    %c0_i32_0 = arith.constant 0 : i32
    %2 = arith.cmpi ne, %1, %c0_i32_0 : i32
    scf.if %2 {
      %cst_28 = arith.constant 0xFF800000 : f32
      %41 = vector.broadcast %cst_28 : f32 to vector<1x1xf32>
      %c0_29 = arith.constant 0 : index
      %c0_30 = arith.constant 0 : index
      %42 = vector.load %arg9[%c0_29, %c0_30] : memref<1x1xf32, #tpu.memory_space<vmem>>, vector<1x1xf32>
      tpu.vector_store %arg9[%c0_29, %c0_30], %41 {strides = array<i32>} : memref<1x1xf32, #tpu.memory_space<vmem>>, vector<1x1xf32>,
      %cst_31 = arith.constant 0.000000e+00 : f32
      %43 = vector.broadcast %cst_31 : f32 to vector<1x1xf32>
      %c0_32 = arith.constant 0 : index
      %c0_33 = arith.constant 0 : index
      %44 = vector.load %arg10[%c0_32, %c0_33] : memref<1x1xf32, #tpu.memory_space<vmem>>, vector<1x1xf32>
      tpu.vector_store %arg10[%c0_32, %c0_33], %43 {strides = array<i32>} : memref<1x1xf32, #tpu.memory_space<vmem>>, vector<1x1xf32>,
      %cst_34 = arith.constant 0.000000e+00 : f32
      %45 = vector.broadcast %cst_34 : f32 to vector<1x128xf32>
      %c0_35 = arith.constant 0 : index
      %c0_36 = arith.constant 0 : index
      %46 = vector.load %arg11[%c0_35, %c0_36] : memref<1x128xf32, #tpu.memory_space<vmem>>, vector<1x128xf32>
      tpu.vector_store %arg11[%c0_35, %c0_36], %45 {strides = array<i32>} : memref<1x128xf32, #tpu.memory_space<vmem>>, vector<1x128xf32>,
    } else {
    }
    %c0 = arith.constant 0 : index
    %c0_1 = arith.constant 0 : index
    %3 = vector.load %arg1[%c0, %c0_1] : memref<16x64xf32, #tpu.memory_space<vmem>>, vector<16x64xf32>
    %c0_2 = arith.constant 0 : index
    %c0_3 = arith.constant 0 : index
    %4 = vector.load %arg2[%c0_2, %c0_3] : memref<64x128xf32, #tpu.memory_space<vmem>>, vector<64x128xf32>
    %cst = arith.constant dense<0.000000e+00> : vector<16x128xf32>
    %5 = tpu.matmul %3, %4, %cst {dimension_numbers = #tpu.dot_dimension_numbers<[1], [0], [0], [1], [0, 0, 1, 1], [], []>} : vector<16x64xf32>, vector<64x128xf32>, vector<16x128xf32> -> vector<16x128xf32>
    %c0_4 = arith.constant 0 : index
    %c0_5 = arith.constant 0 : index
    %6 = vector.load %arg3[%c0_4, %c0_5] : memref<1x128xf32, #tpu.memory_space<vmem>>, vector<1x128xf32>
    %7 = vector.broadcast %6 : vector<1x128xf32> to vector<16x128xf32>
    %8 = arith.addf %5, %7 : vector<16x128xf32>
    %cst_6 = arith.constant 0.000000e+00 : f32
    %9 = vector.broadcast %cst_6 : f32 to vector<16x128xf32>
    %10 = arith.maximumf %8, %9 : vector<16x128xf32>
    %c0_7 = arith.constant 0 : index
    %c0_8 = arith.constant 0 : index
    %11 = vector.load %arg4[%c0_7, %c0_8] : memref<128x1xf32, #tpu.memory_space<vmem>>, vector<128x1xf32>
    %cst_9 = arith.constant dense<0.000000e+00> : vector<16x1xf32>
    %12 = tpu.matmul %10, %11, %cst_9 {dimension_numbers = #tpu.dot_dimension_numbers<[1], [0], [0], [1], [0, 0, 1, 1], [], []>} : vector<16x128xf32>, vector<128x1xf32>, vector<16x1xf32> -> vector<16x1xf32>
    %c0_10 = arith.constant 0 : index
    %c0_11 = arith.constant 0 : index
    %13 = memref.load %arg5[%c0_10, %c0_11] : memref<1x1xf32, #tpu.memory_space<smem>>
    %14 = vector.broadcast %13 : f32 to vector<16x1xf32>
    %15 = arith.addf %12, %14 : vector<16x1xf32>
    %c0_12 = arith.constant 0 : index
    %c0_13 = arith.constant 0 : index
    %16 = vector.load %arg9[%c0_12, %c0_13] : memref<1x1xf32, #tpu.memory_space<vmem>>, vector<1x1xf32>
    %cst_14 = arith.constant dense<0xFF800000> : vector<1xf32>
    %17 = vector.multi_reduction <maximumf>, %15, %cst_14 [0] : vector<16x1xf32> to vector<1xf32>
    %18 = vector.shape_cast %17 : vector<1xf32> to vector<1x1xf32>
    %19 = arith.maximumf %16, %18 : vector<1x1xf32>
    %20 = arith.subf %16, %19 : vector<1x1xf32>
    %21 = math.exp %20 : vector<1x1xf32>
    %22 = vector.broadcast %19 : vector<1x1xf32> to vector<16x1xf32>
    %23 = arith.subf %15, %22 : vector<16x1xf32>
    %24 = math.exp %23 : vector<16x1xf32>
    %c0_15 = arith.constant 0 : index
    %c0_16 = arith.constant 0 : index
    %25 = vector.load %arg10[%c0_15, %c0_16] : memref<1x1xf32, #tpu.memory_space<vmem>>, vector<1x1xf32>
    %26 = arith.mulf %21, %25 : vector<1x1xf32>
    %cst_17 = arith.constant dense<0.000000e+00> : vector<1xf32>
    %27 = vector.multi_reduction <add>, %24, %cst_17 [0] : vector<16x1xf32> to vector<1xf32>
    %28 = vector.shape_cast %27 : vector<1xf32> to vector<1x1xf32>
    %29 = arith.addf %26, %28 : vector<1x1xf32>
    %c0_18 = arith.constant 0 : index
    %c0_19 = arith.constant 0 : index
    %30 = vector.load %arg10[%c0_18, %c0_19] : memref<1x1xf32, #tpu.memory_space<vmem>>, vector<1x1xf32>
    tpu.vector_store %arg10[%c0_18, %c0_19], %29 {strides = array<i32>} : memref<1x1xf32, #tpu.memory_space<vmem>>, vector<1x1xf32>,
    %cst_20 = arith.constant dense<0.000000e+00> : vector<1x128xf32>
    %31 = tpu.matmul %24, %10, %cst_20 {dimension_numbers = #tpu.dot_dimension_numbers<[0], [0], [1], [1], [0, 1, 1, 1], [], []>} : vector<16x1xf32>, vector<16x128xf32>, vector<1x128xf32> -> vector<1x128xf32>
    %c0_21 = arith.constant 0 : index
    %c0_22 = arith.constant 0 : index
    %32 = vector.load %arg11[%c0_21, %c0_22] : memref<1x128xf32, #tpu.memory_space<vmem>>, vector<1x128xf32>
    %33 = vector.broadcast %21 : vector<1x1xf32> to vector<1x128xf32>
    %34 = arith.mulf %33, %32 : vector<1x128xf32>
    %35 = arith.addf %34, %31 : vector<1x128xf32>
    %c0_23 = arith.constant 0 : index
    %c0_24 = arith.constant 0 : index
    %36 = vector.load %arg11[%c0_23, %c0_24] : memref<1x128xf32, #tpu.memory_space<vmem>>, vector<1x128xf32>
    tpu.vector_store %arg11[%c0_23, %c0_24], %35 {strides = array<i32>} : memref<1x128xf32, #tpu.memory_space<vmem>>, vector<1x128xf32>,
    %c0_25 = arith.constant 0 : index
    %c0_26 = arith.constant 0 : index
    %37 = vector.load %arg9[%c0_25, %c0_26] : memref<1x1xf32, #tpu.memory_space<vmem>>, vector<1x1xf32>
    tpu.vector_store %arg9[%c0_25, %c0_26], %19 {strides = array<i32>} : memref<1x1xf32, #tpu.memory_space<vmem>>, vector<1x1xf32>,
    %c3_i32 = arith.constant 3 : i32
    %38 = arith.cmpi eq, %arg0, %c3_i32 : i32
    %39 = arith.extui %38 : i1 to i32
    %c0_i32_27 = arith.constant 0 : i32
    %40 = arith.cmpi ne, %39, %c0_i32_27 : i32
    scf.if %40 {
      %c0_28 = arith.constant 0 : index
      %c0_29 = arith.constant 0 : index
      %41 = vector.load %arg11[%c0_28, %c0_29] : memref<1x128xf32, #tpu.memory_space<vmem>>, vector<1x128xf32>
      %c0_30 = arith.constant 0 : index
      %c0_31 = arith.constant 0 : index
      %42 = vector.load %arg10[%c0_30, %c0_31] : memref<1x1xf32, #tpu.memory_space<vmem>>, vector<1x1xf32>
      %43 = vector.broadcast %42 : vector<1x1xf32> to vector<1x128xf32>
      %44 = arith.divf %41, %43 : vector<1x128xf32>
      %c0_32 = arith.constant 0 : index
      %c0_33 = arith.constant 0 : index
      %45 = vector.load %arg6[%c0_32, %c0_33] : memref<128x128xf32, #tpu.memory_space<vmem>>, vector<128x128xf32>
      %cst_34 = arith.constant dense<0.000000e+00> : vector<1x128xf32>
      %46 = tpu.matmul %44, %45, %cst_34 {dimension_numbers = #tpu.dot_dimension_numbers<[1], [0], [0], [1], [0, 0, 1, 1], [], []>} : vector<1x128xf32>, vector<128x128xf32>, vector<1x128xf32> -> vector<1x128xf32>
      %c0_35 = arith.constant 0 : index
      %c0_36 = arith.constant 0 : index
      %47 = vector.load %arg7[%c0_35, %c0_36] : memref<1x128xf32, #tpu.memory_space<vmem>>, vector<1x128xf32>
      %48 = arith.addf %46, %47 : vector<1x128xf32>
      %c0_37 = arith.constant 0 : index
      %c0_38 = arith.constant 0 : index
      %49 = vector.load %arg8[%c0_37, %c0_38] : memref<1x128xf32, #tpu.memory_space<vmem>>, vector<1x128xf32>
      tpu.vector_store %arg8[%c0_37, %c0_38], %48 {strides = array<i32>} : memref<1x128xf32, #tpu.memory_space<vmem>>, vector<1x128xf32>,
    } else {
    }
    return
  }
  func.func @transform_0(%arg0: i32) -> (i32, i32) {
    %c0_i32 = arith.constant 0 : i32
    %c0_i32_0 = arith.constant 0 : i32
    return %arg0, %c0_i32 : i32, i32
  }
  func.func @transform_1(%arg0: i32) -> (i32, i32) {
    %c0_i32 = arith.constant 0 : i32
    %c0_i32_0 = arith.constant 0 : i32
    %c0_i32_1 = arith.constant 0 : i32
    return %c0_i32, %c0_i32_0 : i32, i32
  }
  func.func @transform_2(%arg0: i32) -> (i32, i32) {
    %c0_i32 = arith.constant 0 : i32
    %c0_i32_0 = arith.constant 0 : i32
    %c0_i32_1 = arith.constant 0 : i32
    return %c0_i32, %c0_i32_0 : i32, i32
  }
  func.func @transform_3(%arg0: i32) -> (i32, i32) {
    %c0_i32 = arith.constant 0 : i32
    %c0_i32_0 = arith.constant 0 : i32
    %c0_i32_1 = arith.constant 0 : i32
    return %c0_i32, %c0_i32_0 : i32, i32
  }
  func.func @transform_4(%arg0: i32) -> (i32, i32) {
    %c0_i32 = arith.constant 0 : i32
    %c0_i32_0 = arith.constant 0 : i32
    %c0_i32_1 = arith.constant 0 : i32
    return %c0_i32, %c0_i32_0 : i32, i32
  }
  func.func @transform_5(%arg0: i32) -> (i32, i32) {
    %c0_i32 = arith.constant 0 : i32
    %c0_i32_0 = arith.constant 0 : i32
    %c0_i32_1 = arith.constant 0 : i32
    return %c0_i32, %c0_i32_0 : i32, i32
  }
  func.func @transform_6(%arg0: i32) -> (i32, i32) {
    %c0_i32 = arith.constant 0 : i32
    %c0_i32_0 = arith.constant 0 : i32
    %c0_i32_1 = arith.constant 0 : i32
    return %c0_i32, %c0_i32_0 : i32, i32
  }
  func.func @transform_7(%arg0: i32) -> (i32, i32) {
    %c0_i32 = arith.constant 0 : i32
    %c0_i32_0 = arith.constant 0 : i32
    %c0_i32_1 = arith.constant 0 : i32
    return %c0_i32, %c0_i32_0 : i32, i32
  }
}

</mosaic_0001>

<bundles_post_ra>
// kernel: tpu_custom_call.1
= control target key start
LH: loop header
LB: loop body
LE: loop exit
PB: predicated region body
PF: predicated region fallthrough
CT: control target
= control target key end

     0   :  { %s1523_s0 = inlined_call_operand.hbm [shape: f32[64,64], index: 0, kind: input, shape index: {}]   ;;  %s1524_s1 = inlined_call_operand.hbm [shape: f32[64,128], index: 1, kind: input, shape index: {}]   ;;  %s1525_s2 = inlined_call_operand.vmem [shape: f32[1,128], index: 2, kind: input, shape index: {}]   ;;  %s1526_s3 = inlined_call_operand.vmem [shape: f32[128,1], index: 3, kind: input, shape index: {}]   ;;  %s1527_s4 = inlined_call_operand.<no memory space> [shape: f32[1,1], index: 4, kind: input, shape index: {}]   ;;  %s1528_s5 = inlined_call_operand.vmem [shape: f32[128,128], index: 5, kind: input, shape index: {}]   ;;  %s1529_s6 = inlined_call_operand.vmem [shape: f32[1,128], index: 6, kind: input, shape index: {}]   ;;  %s1530_s7 = inlined_call_operand.hbm [shape: f32[1,128], index: 7, kind: output, shape index: {}]  }
   0x1   :  { %12 = sst [smem:[#allocation5]] %s1527_s4 }
   0x2   :  { %13 = vsyncpa [#allocation7], 0 }
   0x3   :  { %15 = vsyncpa [#allocation7 + $0x1], 0 }
   0x4   :  { %16 = vsyncpa [#allocation10], 0 }
   0x5   :  { %17 = vsyncpa [#allocation8], 0  ;;  %s1258_s26 = smov 0   ;;  %s1260_s27 = smov 0  }
   0x6   :  { %s1262_s28 = smov 0   ;;  %s1264_s29 = smov 0  }
   0x7 LB: > { %s1277_s4 = sadd.s32 4294967295, %s1200_s29   ;;  %p43_p0 = scmp.ne.s32.totalorder %s1192_s27, %s1188_s26  ;;  %s1200_s29 = sphi %s1264_s29, %s1546_s29   ;;  %s1196_s28 = sphi %s1262_s28, %s1545_s28   ;;  %s1192_s27 = sphi %s1260_s27, %s1544_s27   ;;  %s1188_s26 = sphi %s1258_s26, %s1543_s26  }
   0x8   : > { %p1531_p1 = scmp.eq.s32.totalorder %s1277_s4, 0  ;;  %p838_p2 = scmp.ge.s32.totalorder %s1200_s29, 1 }
   0x9   : > { %p201_p3 = scmp.lt.s32.totalorder %s1200_s29, 5  ;;  %s1202_s9 = smov [#allocation9]  }
   0xa   : > { %p1286_p5 = por %p1531_p1, %p43_p0  ;;  %s213_s10 = sshll.u32 %s1202_s9, 4  ;;  %s214_s10 = int_to_ptr.vmem [resolvable:$true] %s213_s10 }
   0xb   : > { %p1290_p6 = pnand %p838_p2, %p201_p3  ;;  %s1303_s12 = sadd.s32 1, %s1200_s29  }
   0xc   : > { %s1534_s30 = scalar_select %p1286_p5, 1, 0 }
   0xd   : > { %s1535_s8 = scalar_select %p1290_p6, 1, 0 }
   0xe   : > { %p1012_p7 = pneg %p1290_p6  ;;  %s30_s13 = sadd.s32 1, %s1196_s28 }
   0xf   : > { %s27_s14 = ssub.s32 %s1200_s29, %s1303_s12  ;;  %s1091_s15 = scalar_lea.vmem %s214_s10, 1024 }
  0x10   : > { %p1298_p8 = pnand %p1012_p7, %p1531_p1  ;;  %p1092_p10 = scmp.ne.s32.totalorder %s214_s10, %s1091_s15 }
  0x11   : > { %p1099_p13 = scmp.lt.s32.totalorder %s214_s10, %s214_s10  ;;  %p1100_p0 = scmp.lt.s32.totalorder %s1091_s15, %s1091_s15 }
  0x12   : > { %p1082_p9 = pneg %p1298_p8 }
  0x13   : > { %p1101_p2 = por %p1100_p0, %p1099_p13 }
  0x14   : > { %p1094_p11 = pnand %p1092_p10, %p1082_p9 }
  0x16   : > { %p1095_p12 = pneg %p1094_p11 }
  0x18   : > { %p1102_p3 = pnand %p1101_p2, %p1095_p12 }
  0x1a   : > { %1105 = shalt.err (!%p1102_p3)
}
  0x1b   : > { %s1203_s16 = smov 128   ;;  %s1204_s17 = smov 8  }
  0x1c   : > { %1015 = dma.hbm_to_vmem [thread:$0]  (!%p1298_p8), %s1524_s1, 1024, %s214_s10, [#allocation10], %s1203_s16, %s1203_s16, %s1204_s17  }
  0x1d   : > { %p28_p7 = scmp.eq.s32.totalorder %s27_s14, 0  ;;  %p37_p9 = scmp.ne.s32.totalorder %s1196_s28, %s1192_s27 }
  0x1e   : > { %p38_p10 = scmp.eq.s32.totalorder %s1200_s29, 0  ;;  %p1021_p11 = scmp.lt.s32.totalorder %s1200_s29, 4 }
  0x1f   : > { %s1323_s20 = scalar_select %p28_p7, %s1196_s28, %s30_s13  }
  0x20   : > { %p39_p12 = por %p38_p10, %p37_p9  ;;  %s242_s21 = sand.u32 1, %s1196_s28  }
  0x21   : > { %s841_s22 = sshll.u32 %s242_s21, 4  ;;  %s857_s23 = sshll.u32 %s1200_s29, 8 }
  0x22   : > { %s1330_s26 = scalar_lea.hbm %s1523_s0, %s857_s23  ;;  %s246_s9 = scalar_lea.vmem [#allocation6], %s841_s22 }
  0x23   : > { %s253_s10 = sshll.u32 %s246_s9, 4  ;;  %p1334_p8 = pnand %p1021_p11, %p39_p12  ;;  %s1332_s10 = int_to_ptr.vmem [resolvable:$true] %s253_s10 }
  0x24   : > { %s1338_s13 = scalar_lea.sflag [#allocation7], %s242_s21  ;;  %s1106_s29 = scalar_lea.hbm %s1330_s26, 256 }
  0x25   : > { %p1107_p13 = scmp.ne.s32.totalorder %s1330_s26, %s1106_s29  ;;  %p1108_p0 = pneg %p1334_p8 }
  0x26   : > { %s1111_s18 = scalar_lea.hbm %s1523_s0, 1024  ;;  %p1112_p7 = scmp.lt.s32.totalorder %s1330_s26, %s1523_s0 }
  0x27   : > { %p1109_p2 = pnand %p1108_p0, %p1107_p13  ;;  %p1113_p9 = scmp.lt.s32.totalorder %s1111_s18, %s1106_s29 }
  0x29   : > { %p1110_p3 = pneg %p1109_p2  ;;  %p1114_p10 = por %p1113_p9, %p1112_p7 }
  0x2b   : > { %p1115_p11 = pnand %p1114_p10, %p1110_p3 }
  0x2d   : > { %1118 = shalt.err (!%p1115_p11)
}
  0x2e   : > { %s1119_s21 = scalar_lea.vmem %s1332_s10, 256  ;;  %s1205_s23 = smov [#allocation6]  }
  0x2f   : > { %p1120_p12 = scmp.ne.s32.totalorder %s1332_s10, %s1119_s21  ;;  %s1124_s24 = sshll.u32 %s1205_s23, 4  ;;  %s1125_s24 = int_to_ptr.vmem [resolvable:$false] %s1124_s24 }
  0x30   : > { %s1126_s25 = scalar_lea.vmem %s1125_s24, 512  ;;  %p1127_p2 = scmp.lt.s32.totalorder %s1332_s10, %s1125_s24 }
  0x31   : > { %p1122_p4 = pnand %p1120_p12, %p1108_p0  ;;  %p1128_p1 = scmp.lt.s32.totalorder %s1126_s25, %s1119_s21 }
  0x33   : > { %p1123_p13 = pneg %p1122_p4  ;;  %p1129_p5 = por %p1128_p1, %p1127_p2 }
  0x35   : > { %p1130_p6 = pnand %p1129_p5, %p1123_p13 }
  0x37   : > { %1133 = shalt.err (!%p1130_p6)
}
  0x38   : > { %1019 = dma.hbm_to_vmem [thread:$0]  (!%p1334_p8), %s1330_s26, 256, %s1332_s10, %s1338_s13, %s1203_s16, %s1203_s16, %s1204_s17  }
  0x39   : > { %p1538_p4 = scmp.ne.s32.totalorder %s1535_s8, 0 }
  0x3a   : > { %s267_s9 = sand.u32 (!%p1538_p4), 1, %s1192_s27   ;;  %p1539_p1 = scmp.ne.s32.totalorder (!%p1538_p4), %s1534_s30, 0 }
  0x3b   : > { %265 = sbr.rel (%p1538_p4) target bundleno = 1205 (0x4b5), region = 48  ;;  %s1365_s29 = sshll.u32 (!%p1538_p4), %s267_s9, 4 }
  0x3c   : > { %s268_s14 = scalar_lea.sflag (!%p1538_p4), [#allocation7], %s267_s9  ;;  %s271_s15 = scalar_lea.vmem (!%p1538_p4), [#allocation6], %s1365_s29 }
  0x40   : > { %1175 = dma.done.wait (%p1539_p1), %s268_s14, 256  }
  0x41   : > { %1177 = vsyncadd (%p1539_p1), %s268_s14, 4294967040  ;;  %p1540_p5 = scmp.eq.s32.totalorder %s1277_s4, 0 }
  0x43   : > { %1179 = dma.done.wait (%p1540_p5), [#allocation10], 1024   ;;  %p1541_p6 = pmov %p1540_p5 }
  0x44   : > { %p1542_p8 = scmp.ne.s32.totalorder %s1277_s4, 0 }
  0x45   : > { %1181 = vsyncadd (%p1541_p6), [#allocation10], 4294966272 }
  0x46   : > { %305 = sbr.rel (%p1542_p8) target bundleno = 78 (0x4e), region = 60 }
  0x4b   : > { %vm306_vm0 = vcmask 0   ;;  %v1206_v0 = vmov -inf   ;;  %v1207_v1 = vmov 0.0  }
  0x4c   : > { %307 = vst.msk [vmem:[#allocation2] sm:$0x1] %vm306_vm0, %v1206_v0  ;;  %308 = vst.msk [vmem:[#allocation3] sm:$0x1] %vm306_vm0, %v1207_v1 }
  0x4d   : > { %309 = vst [vmem:[#allocation4] sm:$0x1] %v1207_v1 }
  0x4e PF: > { %v319_v2 = vld [vmem:[#allocation9 + $0x38] sm:$0xff]  ;;  %v318_v3 = vld [vmem:[#allocation9 + $0x30] sm:$0xff]  ;;  %vm327_vm1 = vcmask 523264   ;;  %v317_v4 = vld [vmem:[#allocation9 + $0x28] sm:$0xff]  ;;  %v1208_v27 = vmov 0.0   ;;  %v1209_v36 = vmov 0   ;;  %v520_v47 = vlaneseq }
  0x4f   : > { %906 = vmatprep.subr.mxu0 %v319_v2  ;;  %v310_v5 = vld [vmem:[%s271_s15] sm:$0xff]  ;;  %v315_v10 = vld [vmem:[#allocation9 + $0x18] sm:$0xff]  ;;  %v313_v14 = vld [vmem:[#allocation9 + $0x8] sm:$0xff]  ;;  %1069 = vset.pattern.permute.xlu1 %v1209_v36  ;;  %s427_s9 = sld [smem:[#allocation5]]  ;;  %vm505_vm2 = vcmask 7168   ;;  %vm543_vm3 = vcmask 0  }
  0x50   : > { %907 = vmatpush3.msra.mxu0 %v319_v2  ;;  %922 = vmatprep.mubr.msk.f32.mxu0 %vm327_vm1, %v310_v5  ;;  %v426_v6 = vld [vmem:[%s1526_s3 + $0x78] sm:$0xff]  ;;  %v425_v7 = vld [vmem:[%s1526_s3 + $0x70] sm:$0xff]  ;;  %v316_v8 = vld [vmem:[#allocation9 + $0x20] sm:$0xff]  ;;  %v521_v50 = vshrl.u32 %v520_v47, 7  ;;  %vm1210_vm4 = vmmov 0   ;;  %vm577_vm5 = vcmask 130048  }
  0x51   : > { %908 = vmatprep.subr.mxu0 %v318_v3  ;;  %925 = vmatprep.subr.mxu1 %v426_v6  ;;  %v424_v9 = vld [vmem:[%s1526_s3 + $0x68] sm:$0xff]  ;;  %v423_v11 = vld [vmem:[%s1526_s3 + $0x60] sm:$0xff]  ;;  %v314_v12 = vld [vmem:[#allocation9 + $0x10] sm:$0xff]  ;;  %p852_p0 = scmp.ne.s32.totalorder %s1277_s4, 3 }
  0x52   : > { %909 = vmatpush3.msra.mxu0 %v318_v3  ;;  %926 = vmatpush3.msra.mxu1 %v426_v6  ;;  %v422_v13 = vld [vmem:[%s1526_s3 + $0x58] sm:$0xff]  ;;  %v421_v15 = vld [vmem:[%s1526_s3 + $0x50] sm:$0xff]  ;;  %v312_v16 = vld [vmem:[#allocation9] sm:$0xff]  ;;  %v1437_v54 = vsub.s32 0, %v521_v50 }
  0x53   : > { %910 = vmatprep.subr.mxu0 %v317_v4  ;;  %927 = vmatprep.subr.mxu1 %v425_v7  ;;  %v420_v17 = vld [vmem:[%s1526_s3 + $0x48] sm:$0xff]  ;;  %v419_v19 = vld [vmem:[%s1526_s3 + $0x40] sm:$0xff]  ;;  %v418_v20 = vld [vmem:[%s1526_s3 + $0x38] sm:$0xff] }
  0x54   : > { %911 = vmatpush3.msra.mxu0 %v317_v4  ;;  %928 = vmatpush3.msra.mxu1 %v425_v7  ;;  %v311_v18 = vld [vmem:[%s271_s15 + $0x8] sm:$0xff] }
  0x55   : > { %912 = vmatprep.subr.mxu0 %v316_v8  ;;  %929 = vmatprep.subr.mxu1 %v424_v9  ;;  %v417_v21 = vld [vmem:[%s1526_s3 + $0x30] sm:$0xff]  ;;  %v416_v22 = vld [vmem:[%s1526_s3 + $0x28] sm:$0xff]  ;;  %v415_v23 = vld [vmem:[%s1526_s3 + $0x20] sm:$0xff]  ;;  %v428_v37 = vstv %s427_s9 }
  0x56   : > { %913 = vmatpush3.msra.mxu0 %v316_v8  ;;  %930 = vmatpush3.msra.mxu1 %v424_v9  ;;  %v414_v24 = vld [vmem:[%s1526_s3 + $0x18] sm:$0xff]  ;;  %v413_v25 = vld [vmem:[%s1526_s3 + $0x10] sm:$0xff]  ;;  %v412_v26 = vld [vmem:[%s1526_s3 + $0x8] sm:$0xff] }
  0x57   : > { %914 = vmatprep.subr.mxu0 %v315_v10  ;;  %931 = vmatprep.subr.mxu1 %v423_v11  ;;  %v411_v28 = vld [vmem:[%s1526_s3] sm:$0xff] }
  0x58   : > { %915 = vmatpush3.msra.mxu0 %v315_v10  ;;  %932 = vmatpush3.msra.mxu1 %v423_v11  ;;  %v848_v29 = vld [vmem:[%s1525_s2] ss:$0 sm:$0xff]  ;;  %v531_v9 = vld [vmem:[#allocation3] sm:$0x1] }
  0x59   : > { %916 = vmatprep.subr.mxu0 %v314_v12  ;;  %933 = vmatprep.subr.mxu1 %v422_v13  ;;  %v504_v52 = vld [vmem:[#allocation2] sm:$0x1] }
  0x5a   : > { %917 = vmatpush3.msra.mxu0 %v314_v12  ;;  %934 = vmatpush3.msra.mxu1 %v422_v13 }
  0x5b   : > { %918 = vmatprep.subr.mxu0 %v313_v14  ;;  %935 = vmatprep.subr.mxu1 %v421_v15 }
  0x5c   : > { %919 = vmatpush3.msra.mxu0 %v313_v14  ;;  %936 = vmatpush3.msra.mxu1 %v421_v15 }
  0x5d   : > { %920 = vmatprep.subr.mxu0 %v312_v16  ;;  %937 = vmatprep.subr.mxu1 %v420_v17 }
  0x5e   : > { %921 = vmatpush3.msra.mxu0 %v312_v16  ;;  %938 = vmatpush3.msra.mxu1 %v420_v17  ;;  %v651_v17 = vld [vmem:[#allocation4] sm:$0x1] }
  0x5f   : > { %923 = vmatmul.mubr.msk.f32.vlgmr.msra.gmra.mxu0 %vm327_vm1, %v311_v18  ;;  %939 = vmatprep.subr.mxu1 %v419_v19 }
  0x60   : > { %940 = vmatpush3.msra.mxu1 %v419_v19  ;;  %960 = vmatprep.subr.mxu0 %v1208_v27 }
  0x61   : > { %941 = vmatprep.subr.mxu1 %v418_v20  ;;  %964 = vmatprep.mubr.msk.f32.mxu0 %vm1210_vm4, %v1208_v27 }
  0x62   : > { %942 = vmatpush3.msra.mxu1 %v418_v20 }
  0x63   : > { %943 = vmatprep.subr.mxu1 %v417_v21 }
  0x64   : > { %944 = vmatpush3.msra.mxu1 %v417_v21 }
  0x65   : > { %945 = vmatprep.subr.mxu1 %v416_v22 }
  0x66   : > { %946 = vmatpush3.msra.mxu1 %v416_v22 }
  0x67   : > { %947 = vmatprep.subr.mxu1 %v415_v23 }
  0x68   : > { %948 = vmatpush3.msra.mxu1 %v415_v23 }
  0x69   : > { %949 = vmatprep.subr.mxu1 %v414_v24 }
  0x6a   : > { %950 = vmatpush3.msra.mxu1 %v414_v24 }
  0x6b   : > { %951 = vmatprep.subr.mxu1 %v413_v25 }
  0x6c   : > { %952 = vmatpush3.msra.mxu1 %v413_v25 }
  0x6d   : > { %953 = vmatprep.subr.mxu1 %v412_v26 }
  0x6e   : > { %954 = vmatpush3.msra.mxu1 %v412_v26 }
  0x6f   : > { %955 = vmatprep.subr.mxu1 %v411_v28 }
  0x70   : > { %956 = vmatpush3.msra.mxu1 %v411_v28 }
 0x11f   : > { %v924_v30 = vpop.f32.mrf.mxu0 }
 0x120   : > { %v406_v31 = vadd.f32 %v924_v30, %v848_v29 }
 0x121   : > { %v400_v32 = vpop.f32.mrf.mxu0 }
 0x122   : > { %v410_v33 = vmax.f32 %v406_v31, 0.0  ;;  %v401_v34 = vadd.f32 %v848_v29, %v400_v32 }
 0x124   : > { %v409_v35 = vmax.f32 %v401_v34, 0.0  ;;  %961 = vmatpush3.msra.mxu0 %v410_v33 }
 0x125   : > { %962 = vmatprep.subr.mxu0 %v1208_v27 }
 0x126   : > { %957 = vmatprep.mubr.f32.mxu1 %v409_v35  ;;  %963 = vmatpush3.msra.mxu0 %v409_v35 }
 0x127   : > { %958 = vmatmul.mubr.f32.vlgmr.msra.gmra.mxu1 %v410_v33 }
 0x1e7   : > { %v959_v38 = vpop.f32.mrf.mxu1 }
 0x1e8   : > { %v501_v39 = vadd.f32 %v959_v38, %v428_v37 }
 0x1e9   : > { %v495_v40 = vpop.f32.mrf.mxu1 }
 0x1ea   : > { %v496_v41 = vadd.f32 %v495_v40, %v428_v37  ;;  %v507_v42 = vsel %vm505_vm2, %v501_v39, -inf }
 0x1ec   : > { %v506_v43 = vsel %vm505_vm2, %v496_v41, -inf }
 0x1ed   : > { %v508_v44 = vmax.f32 %v506_v43, %v507_v42 }
 0x1ef   : > { %v509_v45 = vrot.slane %v508_v44, 4 }
 0x1f1   : > { %v510_v46 = vmax.f32 %v508_v44, %v509_v45 }
 0x1f3   : > { %v511_v48 = vrot.slane %v510_v46, 2 }
 0x1f5   : > { %v512_v49 = vmax.f32 %v510_v46, %v511_v48 }
 0x1f7   : > { %v513_v51 = vrot.slane %v512_v49, 1 }
 0x1f9   : > { %v514_v53 = vmax.f32 %v512_v49, %v513_v51 }
 0x1fb   : > { %v515_v55 = vmax.f32 %v504_v52, %v514_v53 }
 0x1fd   : > { %v516_v56 = vsub.f32 %v504_v52, %v515_v55  ;;  %v523_v57 = vrot.slane %v515_v55, %v1437_v54  ;;  %664 = vst.msk [vmem:[#allocation2] sm:$0x1] %vm543_vm3, %v515_v55 }
 0x1ff   : > { %v525_v58 = vsub.f32 %v496_v41, %v523_v57  ;;  %v526_v59 = vsub.f32 %v501_v39, %v523_v57  ;;  %v517_v60 = vmul.f32 1.442695, %v516_v56 }
 0x201   : > { %v527_v61 = vmul.f32 1.442695, %v525_v58  ;;  %v529_v62 = vmul.f32 1.442695, %v526_v59  ;;  %1071 = vpow2.f32 %v517_v60 }
 0x203   : > { %1073 = vpow2.f32 %v527_v61 }
 0x204   : > { %1075 = vpow2.f32 %v529_v62 }
 0x20e   : > { %v1072_v63 = vpop.eup %1071 }
 0x20f   : > { %654 = vperm.xlu1 %1069, %v1072_v63   ;;  %v532_v12 = vmul.f32 %v1072_v63, %v531_v9 }
 0x210   : > { %v1074_v0 = vpop.eup %1073 }
 0x211   : > { %v1076_v1 = vpop.eup %1075  ;;  %v533_v2 = vsel %vm505_vm2, %v1074_v0, 0.0  ;;  %545 = vxpose.xlu0.b32.start [1/2] (short) (narrow) %v1074_v0, 8 }
 0x212   : > { %v534_v3 = vsel %vm505_vm2, %v1076_v1, 0.0 }
 0x213   : > { %v535_v4 = vadd.f32 %v534_v3, %v533_v2 }
 0x215   : > { %v536_v5 = vrot.slane %v535_v4, 4  ;;  %546 = vxpose.xlu0.b32.end [2/2] (short) (narrow) %v1076_v1, 8 }
 0x217   : > { %v537_v6 = vadd.f32 %v536_v5, %v535_v4 }
 0x219   : > { %v538_v7 = vrot.slane %v537_v6, 2 }
 0x21b   : > { %v539_v8 = vadd.f32 %v538_v7, %v537_v6 }
 0x21d   : > { %v540_v10 = vrot.slane %v539_v8, 1 }
 0x21f   : > { %v541_v11 = vadd.f32 %v540_v10, %v539_v8 }
 0x221   : > { %v542_v13 = vadd.f32 %v541_v11, %v532_v12 }
 0x223   : > { %544 = vst.msk [vmem:[#allocation3] sm:$0x1] %vm543_vm3, %v542_v13 }
 0x23e   : > { %1070 = vset.pattern.permute.xlu0 %v1209_v36 }
 0x28a   : > { %v655_v15 = vpop.permute.xlu1 %654 }
 0x28b   : > { %v660_v16 = vrot.slane %v655_v15, %v1437_v54 }
 0x28d   : > { %v561_v14 = vpop.trf.xlu0  ;;  %v661_v18 = vmul.f32 %v660_v16, %v651_v17 }
 0x28e   : > { %965 = vmatmul.mubr.msk.f32.vlgmr.msra.gmra.mxu0 %vm577_vm5, %v561_v14 }
 0x34d   : > { %668 = sbr.rel (%p852_p0) target bundleno = 1190 (0x4a6), region = 64 }
 0x34e   : > { %v647_v19 = vpop.f32.mrf.mxu0 }
 0x34f   : > { %v662_v20 = vadd.f32 %v661_v18, %v647_v19 }
 0x350   : > { %v966_v21 = vpop.f32.mrf.mxu0 }
 0x351   : > { %663 = vst [vmem:[#allocation4] sm:$0x1] %v662_v20 }
 0x352   : > { %v670_v22 = vld [vmem:[#allocation3] sm:$0x1]  ;;  %v697_v23 = vld [vmem:[%s1528_s5 + $0x78] sm:$0xff]  ;;  %v1211_v24 = vmov 0   ;;  %v1212_v25 = vmov 0.0   ;;  %v696_v26 = vld [vmem:[%s1528_s5 + $0x70] sm:$0xff] }
 0x353   : > { %1077 = vset.pattern.permute.xlu0 %v1211_v24  ;;  %967 = vmatprep.subr.mxu0 %v1212_v25  ;;  %v695_v27 = vld [vmem:[%s1528_s5 + $0x68] sm:$0xff]  ;;  %vm1213_vm6 = vmmov 0   ;;  %v694_v28 = vld [vmem:[%s1528_s5 + $0x60] sm:$0xff]  ;;  %v693_v29 = vld [vmem:[%s1528_s5 + $0x58] sm:$0xff] }
 0x354   : > { %673 = vperm.xlu0 %1077, %v670_v22   ;;  %968 = vmatpush3.msra.mxu0 %v697_v23  ;;  %v692_v30 = vld [vmem:[%s1528_s5 + $0x50] sm:$0xff]  ;;  %v691_v31 = vld [vmem:[%s1528_s5 + $0x48] sm:$0xff]  ;;  %v690_v32 = vld [vmem:[%s1528_s5 + $0x40] sm:$0xff] }
 0x355   : > { %969 = vmatprep.subr.mxu0 %v1212_v25  ;;  %999 = vmatprep.mubr.msk.f32.mxu0 %vm1213_vm6, %v1212_v25  ;;  %v689_v33 = vld [vmem:[%s1528_s5 + $0x38] sm:$0xff]  ;;  %v688_v34 = vld [vmem:[%s1528_s5 + $0x30] sm:$0xff]  ;;  %v687_v35 = vld [vmem:[%s1528_s5 + $0x28] sm:$0xff] }
 0x356   : > { %970 = vmatpush3.msra.mxu0 %v696_v26  ;;  %v686_v36 = vld [vmem:[%s1528_s5 + $0x20] sm:$0xff]  ;;  %v685_v37 = vld [vmem:[%s1528_s5 + $0x18] sm:$0xff]  ;;  %v684_v38 = vld [vmem:[%s1528_s5 + $0x10] sm:$0xff] }
 0x357   : > { %971 = vmatprep.subr.mxu0 %v1212_v25  ;;  %v683_v39 = vld [vmem:[%s1528_s5 + $0x8] sm:$0xff]  ;;  %v682_v40 = vld [vmem:[%s1528_s5] sm:$0xff] }
 0x358   : > { %972 = vmatpush3.msra.mxu0 %v695_v27  ;;  %v669_v43 = vld [vmem:[#allocation4] sm:$0x1]  ;;  %v698_v46 = vld [vmem:[%s1529_s6] sm:$0x1] }
 0x359   : > { %973 = vmatprep.subr.mxu0 %v1212_v25 }
 0x35a   : > { %974 = vmatpush3.msra.mxu0 %v694_v28 }
 0x35b   : > { %975 = vmatprep.subr.mxu0 %v1212_v25 }
 0x35c   : > { %976 = vmatpush3.msra.mxu0 %v693_v29 }
 0x35d   : > { %977 = vmatprep.subr.mxu0 %v1212_v25 }
 0x35e   : > { %978 = vmatpush3.msra.mxu0 %v692_v30 }
 0x35f   : > { %979 = vmatprep.subr.mxu0 %v1212_v25 }
 0x360   : > { %980 = vmatpush3.msra.mxu0 %v691_v31 }
 0x361   : > { %981 = vmatprep.subr.mxu0 %v1212_v25 }
 0x362   : > { %982 = vmatpush3.msra.mxu0 %v690_v32 }
 0x363   : > { %983 = vmatprep.subr.mxu0 %v1212_v25 }
 0x364   : > { %984 = vmatpush3.msra.mxu0 %v689_v33 }
 0x365   : > { %985 = vmatprep.subr.mxu0 %v1212_v25 }
 0x366   : > { %986 = vmatpush3.msra.mxu0 %v688_v34 }
 0x367   : > { %987 = vmatprep.subr.mxu0 %v1212_v25 }
 0x368   : > { %988 = vmatpush3.msra.mxu0 %v687_v35 }
 0x369   : > { %989 = vmatprep.subr.mxu0 %v1212_v25 }
 0x36a   : > { %990 = vmatpush3.msra.mxu0 %v686_v36 }
 0x36b   : > { %991 = vmatprep.subr.mxu0 %v1212_v25 }
 0x36c   : > { %992 = vmatpush3.msra.mxu0 %v685_v37 }
 0x36d   : > { %993 = vmatprep.subr.mxu0 %v1212_v25 }
 0x36e   : > { %994 = vmatpush3.msra.mxu0 %v684_v38 }
 0x36f   : > { %995 = vmatprep.subr.mxu0 %v1212_v25 }
 0x370   : > { %996 = vmatpush3.msra.mxu0 %v683_v39 }
 0x371   : > { %997 = vmatprep.subr.mxu0 %v1212_v25 }
 0x372   : > { %998 = vmatpush3.msra.mxu0 %v682_v40 }
 0x3cf   : > { %v674_v41 = vpop.permute.xlu0 %673 }
 0x3d0   : > { %v679_v42 = vrot.slane %v674_v41, %v1437_v54 }
 0x3d2   : > { %1078 = vrcp.f32 %v679_v42 }
 0x3df   : > { %v1079_v44 = vpop.eup %1078 }
 0x3e0   : > { %v681_v45 = vmul.f32 %v1079_v44, %v669_v43 }
 0x3e2   : > { %1000 = vmatmul.mubr.f32.vlgmr.msra.gmra.mxu0 %v681_v45 }
 0x4a2   : > { %v765_v47 = vpop.f32.mrf.mxu0 }
 0x4a3   : > { %v766_v48 = vadd.f32 %v765_v47, %v698_v46 }
 0x4a4   : > { %v1001_v49 = vpop.f32.mrf.mxu0 }
 0x4a5   : > { %769 = vst [vmem:[#allocation11] sm:$0x1] %v766_v48 }
 0x4a6 PF: > { %p1023_p3 = scmp.eq.s32.totalorder %s1277_s4, 3  ;;  %s1214_s23 = smov [#allocation11]  }
 0x4a7   : > { %s777_s24 = sshll.u32 %s1214_s23, 4  ;;  %s778_s24 = int_to_ptr.vmem [resolvable:$true] %s777_s24 }
 0x4a8   : > { %s1134_s25 = scalar_lea.vmem %s778_s24, 16  ;;  %s1140_s9 = scalar_lea.vmem %s778_s24, 32 }
 0x4a9   : > { %p1135_p7 = scmp.ne.s32.totalorder %s778_s24, %s1134_s25  ;;  %p1141_p11 = scmp.lt.s32.totalorder %s778_s24, %s778_s24 }
 0x4aa   : > { %p1142_p12 = scmp.lt.s32.totalorder %s1140_s9, %s1134_s25 }
 0x4ab   : > { %p1136_p9 = pnand %p1135_p7, %p1023_p3 }
 0x4ac   : > { %p1143_p13 = por %p1142_p12, %p1141_p11 }
 0x4ad   : > { %p1137_p10 = pneg %p1136_p9 }
 0x4af   : > { %p1144_p2 = pnand %p1143_p13, %p1137_p10 }
 0x4b1   : > { %1147 = shalt.err (!%p1144_p2)
}
 0x4b2   : > { %1009 = dma.vmem_to_hbm [thread:$0]  (%p1023_p3), %s778_s24, 16, %s1530_s7, [#allocation8]  }
 0x4b3   : > { %1183 = dma.done.wait (%p1023_p3), [#allocation8], 16  }
 0x4b4   : > { %1185 = vsyncadd (%p1023_p3), [#allocation8], 4294967280 }
 0x4b5 PF: > { %p20_p4 = scmp.ge.s32.totalorder %s1303_s12, 6   ;;  %s1543_s26 = smov %s1192_s27 }
 0x4b6   : > { %s1544_s27 = smov %s1196_s28  ;;  %s1545_s28 = smov %s1323_s20 }
 0x4b7   : > { %s1546_s29 = smov %s1303_s12  ;;  %22 = sbr.rel (!%p20_p4) target bundleno = 7 (0x7), region = 97 }
 0x4bc   :  { %790 = vsyncpa [#allocation7], 1 }
 0x4bd   :  { %792 = vsyncpa [#allocation7 + $0x1], 1 }
 0x4be   :  { %793 = vsyncpa [#allocation10], 1 }
 0x4bf   :  { %794 = vsyncpa [#allocation8], 1 }
 0x4c0   :  { %796 = vsyncpa [#allocation8 + $0x1], 1 }

</bundles_post_ra>
